<compile_context>
chip_gen: v7x
topology: tpu7x:2x2x1
jax: 0.10.0
libtpu: 0.0.40
codegen_flags: <defaults>
</compile_context>

<pallas_src>
import jax
import jax.numpy as jnp
from jax import lax
from jax.experimental import pallas as pl
from jax.experimental.pallas import tpu as pltpu


def _mc_head_kernel(x_ref, w_ref, b_ref, o_ref):
    # x_ref: (TILE_B, H)  -- CLS hidden vectors for this batch tile
    # w_ref: (C, H)       -- Linear weight, lane-dense (H on lanes)
    # b_ref: (1, C)       -- Linear bias
    # o_ref: (TILE_B, C)
    acc = lax.dot_general(
        x_ref[...], w_ref[...],
        dimension_numbers=(((1,), (1,)), ((), ())),   # contract on H
        preferred_element_type=jnp.float32,
    )
    o_ref[...] = (acc + b_ref[...]).astype(o_ref.dtype)


def _pick_tile_b(batch, hidden, itemsize):
    # Keep one x tile <= ~4 MiB so the double-buffered pipeline sits well
    # below v7x's 64 MiB physical VMEM (and trivially inside v5e/v6e 128 MiB).
    cap = (4 * 1024 * 1024) // max(1, hidden * itemsize)
    cap = max(8, min(512, (cap // 8) * 8))     # multiple of 8 (sublane)
    return batch if batch <= cap else cap


def multiple_choice_head(x, weight, bias):
    """x: (B, S, H); weight: (n_choices, H); bias: (n_choices,)."""
    B, S, H = x.shape
    C, Hw = weight.shape
    assert Hw == H and bias.shape == (C,)

    itemsize = jnp.dtype(x.dtype).itemsize

    # Fused CLS slice: the (B, S, H) activation viewed as (B, S*H) is a free
    # contiguous reshape; the CLS hidden vector is exactly the first H columns
    # of each row, so the x BlockSpec DMAs only those H lanes per batch row.
    if S == 1 or H % 128 == 0:
        x2 = x.reshape(B, S * H)
    else:
        # Lane-unaligned H with S > 1: fall back to a wrapper slice (one extra
        # B*H copy) so the block's last dim stays lane-legal.
        x2 = x[:, 0, :]

    tile_b = _pick_tile_b(B, H, itemsize)
    grid = (pl.cdiv(B, tile_b),)

    b2 = bias.reshape(1, C)

    # Rough VMEM budget (double-buffered x/out + resident weight/bias), with
    # headroom, made explicit so the kernel never silently overshoots v7x.
    lanes_c = max(C, 128)
    vmem_need = (2 * tile_b * H * itemsize          # x tiles (double buffered)
                 + 2 * C * H * itemsize             # weight (resident)
                 + 2 * tile_b * lanes_c * 4         # output tiles (lane padded)
                 + 2 * 8 * lanes_c * 4)             # bias
    vmem_limit = int(min(48 * 1024 * 1024, max(16 * 1024 * 1024, 2 * vmem_need)))

    cost = pl.CostEstimate(
        flops=2 * B * H * C,
        transcendentals=0,
        bytes_accessed=(B * H + C * H + C + B * C) * itemsize,
    )

    out = pl.pallas_call(
        _mc_head_kernel,
        out_shape=jax.ShapeDtypeStruct((B, C), x.dtype),
        grid=grid,
        in_specs=[
            # Column-block 0 of the (B, S*H) view == the CLS token's H lanes.
            pl.BlockSpec((tile_b, H), lambda i: (i, 0)),
            pl.BlockSpec((C, H), lambda i: (0, 0)),     # weight stays resident
            pl.BlockSpec((1, C), lambda i: (0, 0)),     # bias stays resident
        ],
        out_specs=pl.BlockSpec((tile_b, C), lambda i: (i, 0)),
        compiler_params=pltpu.CompilerParams(
            dimension_semantics=("parallel",),          # v7x 2 TCs; no-op v5e/v6e
            vmem_limit_bytes=vmem_limit,
        ),
        cost_estimate=cost,
    )(x2, weight, b2)

    # Matches PyTorch's final .view(-1, n_choices) (already that shape).
    return out.reshape(-1, C)


if __name__ == "__main__":
    # Small shapes consistent with the module's forward (H chosen lane-aligned
    # so the fused CLS-slice path is exercised).
    B, S, H = 2, 8, 128
    n_choices = 4

    key = jax.random.PRNGKey(0)
    k_x, k_w, k_b = jax.random.split(key, 3)

    x = jax.random.normal(k_x, (B, S, H), dtype=jnp.float32)

    # Deterministic Linear params (uniform +/- 1/sqrt(H), like PyTorch default).
    bound = 1.0 / jnp.sqrt(jnp.float32(H))
    weight = jax.random.uniform(k_w, (n_choices, H), jnp.float32, -bound, bound)
    bias = jax.random.uniform(k_b, (n_choices,), jnp.float32, -bound, bound)

    fn = jax.jit(multiple_choice_head)
    out = jax.block_until_ready(fn(x, weight, bias))

    # Pure-JAX reference check.
    ref = x[:, 0, :] @ weight.T + bias
    assert out.shape == (B, n_choices)
    assert jnp.allclose(out, ref, atol=1e-5, rtol=1e-5)

    print("KERNEL_OK")
</pallas_src>

<mosaic_0001>
module attributes {stable_mosaic.version = 11 : i64} {
  func.func @_mc_head_kernel(%arg0: i32, %arg1: memref<2x128xf32, #tpu.memory_space<vmem>>, %arg2: memref<4x128xf32, #tpu.memory_space<vmem>>, %arg3: memref<1x4xf32, #tpu.memory_space<vmem>>, %arg4: memref<2x4xf32, #tpu.memory_space<vmem>>) attributes {dimension_semantics = [#tpu.dimension_semantics<parallel>], iteration_bounds = array<i64: 1>, scalar_prefetch = 0 : i64, scratch_operands = 0 : i64, tpu.core_type = #tpu.core_type<tc>, window_params = [{transform_indices = @transform_0, window_bounds = array<i64: 2, 128>}, {pipeline_mode = #tpu.pipeline_mode<synchronous>, transform_indices = @transform_1, window_bounds = array<i64: 4, 128>}, {pipeline_mode = #tpu.pipeline_mode<synchronous>, transform_indices = @transform_2, window_bounds = array<i64: 1, 4>}, {transform_indices = @transform_3, window_bounds = array<i64: 2, 4>}]} {
    %c0 = arith.constant 0 : index
    %c0_0 = arith.constant 0 : index
    %0 = vector.load %arg1[%c0, %c0_0] : memref<2x128xf32, #tpu.memory_space<vmem>>, vector<2x128xf32>
    %c0_1 = arith.constant 0 : index
    %c0_2 = arith.constant 0 : index
    %1 = vector.load %arg2[%c0_1, %c0_2] : memref<4x128xf32, #tpu.memory_space<vmem>>, vector<4x128xf32>
    %cst = arith.constant dense<0.000000e+00> : vector<2x4xf32>
    %2 = tpu.matmul %0, %1, %cst {dimension_numbers = #tpu.dot_dimension_numbers<[1], [1], [0], [0], [0, 0, 1, 0], [], []>} : vector<2x128xf32>, vector<4x128xf32>, vector<2x4xf32> -> vector<2x4xf32>
    %c0_3 = arith.constant 0 : index
    %c0_4 = arith.constant 0 : index
    %3 = vector.load %arg3[%c0_3, %c0_4] : memref<1x4xf32, #tpu.memory_space<vmem>>, vector<1x4xf32>
    %4 = vector.broadcast %3 : vector<1x4xf32> to vector<2x4xf32>
    %5 = arith.addf %2, %4 : vector<2x4xf32>
    %c0_5 = arith.constant 0 : index
    %c0_6 = arith.constant 0 : index
    %6 = vector.load %arg4[%c0_5, %c0_6] : memref<2x4xf32, #tpu.memory_space<vmem>>, vector<2x4xf32>
    tpu.vector_store %arg4[%c0_5, %c0_6], %5 {strides = array<i32>} : memref<2x4xf32, #tpu.memory_space<vmem>>, vector<2x4xf32>,
    return
  }
  func.func @transform_0(%arg0: i32) -> (i32, i32) {
    %c0_i32 = arith.constant 0 : i32
    %c0_i32_0 = arith.constant 0 : i32
    return %arg0, %c0_i32 : i32, i32
  }
  func.func @transform_1(%arg0: i32) -> (i32, i32) {
    %c0_i32 = arith.constant 0 : i32
    %c0_i32_0 = arith.constant 0 : i32
    %c0_i32_1 = arith.constant 0 : i32
    return %c0_i32, %c0_i32_0 : i32, i32
  }
  func.func @transform_2(%arg0: i32) -> (i32, i32) {
    %c0_i32 = arith.constant 0 : i32
    %c0_i32_0 = arith.constant 0 : i32
    %c0_i32_1 = arith.constant 0 : i32
    return %c0_i32, %c0_i32_0 : i32, i32
  }
  func.func @transform_3(%arg0: i32) -> (i32, i32) {
    %c0_i32 = arith.constant 0 : i32
    %c0_i32_0 = arith.constant 0 : i32
    return %arg0, %c0_i32 : i32, i32
  }
}

</mosaic_0001>

<bundles_post_ra>
// kernel: multiple_choice_head.1
= control target key start
LH: loop header
LB: loop body
LE: loop exit
PB: predicated region body
PF: predicated region fallthrough
CT: control target
= control target key end

     0   :  { %v145_v1 = vmov 0.0   ;;  %vm146_vm0 = vmmov 0   ;;  %s189_s0 = inlined_call_operand.vmem [shape: f32[2,1024], index: 0, kind: input, shape index: {}]   ;;  %s190_s1 = inlined_call_operand.vmem [shape: f32[4,128], index: 1, kind: input, shape index: {}]   ;;  %s191_s2 = inlined_call_operand.vmem [shape: f32[1,4], index: 2, kind: input, shape index: {}]   ;;  %s192_s3 = inlined_call_operand.hbm [shape: f32[2,4], index: 3, kind: output, shape index: {}]  }
   0x1   :  { %v16_v0 = vld [vmem:[%s190_s1] sm:$0xf]  ;;  %113 = vmatprep.subr.mxu0 %v145_v1  ;;  %115 = vmatprep.mubr.msk.f32.mxu0 %vm146_vm0, %v145_v1 }
   0x2   :  { %8 = vsyncpa [#allocation3], 0  ;;  %114 = vmatpush3.xpose.msra.mxu0 %v16_v0  ;;  %v15_v2 = vld [vmem:[%s189_s0] sm:$0x3]  ;;  %s147_s18 = smov [#allocation2]   ;;  %vm94_vm1 = vcmask 25600  }
   0x3   :  { %v110_v3 = vld [vmem:[%s191_s2] ss:$0 sm:$0xff]  ;;  %s102_s19 = sshll.u32 %s147_s18, 4  ;;  %s103_s19 = int_to_ptr.vmem [resolvable:$true] %s102_s19 }
   0x4   :  { %s121_s1 = scalar_lea.vmem %s103_s19, 32  ;;  %p126_p1 = scmp.lt.s32.totalorder %s103_s19, %s103_s19 }
   0x5   :  { %116 = vmatmul.mubr.f32.vlgmr.msra.gmra.mrb[0].mxu0 %v15_v2  ;;  %p122_p0 = scmp.ne.s32.totalorder %s103_s19, %s121_s1  ;;  %p127_p2 = scmp.lt.s32.totalorder %s121_s1, %s121_s1 }
   0x7   :  { %p128_p3 = por %p127_p2, %p126_p1 }
   0x9   :  { %p129_p4 = pnand %p128_p3, %p122_p0 }
  0xd8   :  { %v90_v4 = vpop.f32.mrb[0].mxu0 }
  0xd9   :  { %v91_v5 = vadd.f32 %v110_v3, %v90_v4  ;;  %v117_v6 = vpop.f32.mrb[1].mxu0 }
  0xdb   :  { %95 = vst.msk [vmem:[#allocation2] sm:$0x3] %vm94_vm1, %v91_v5 }
  0xdc   :  { %132 = shalt.err (!%p129_p4)
}
  0xdd   :  { %s133_s21 = scalar_lea.hbm %s192_s3, 32 }
  0xde   :  { %p134_p5 = scmp.ne.s32.totalorder %s192_s3, %s133_s21  ;;  %p137_p6 = scmp.lt.u32.totalorder %s133_s21, %s192_s3 }
  0xe0   :  { %p139_p7 = pnand %p137_p6, %p134_p5 }
  0xe2   :  { %142 = shalt.err (!%p139_p7)
}
  0xe3   :  { %105 = dma.vmem_to_hbm [thread:$0]  %s103_s19, 32, %s192_s3, [#allocation3]  }
  0xe4   :  { %143 = dma.done.wait [#allocation3], 32  }
  0xe5   :  { %144 = vsyncadd [#allocation3], 4294967264 }
  0xe6   :  { %109 = vsyncpa [#allocation3], 1 }

</bundles_post_ra>
